<compile_context>
chip_gen: v6e
topology: v6e:2x2x1
jax: 0.10.0
libtpu: 0.0.40
codegen_flags: <defaults>
</compile_context>

<pallas_src>
import jax
import jax.numpy as jnp
import numpy as np
from jax import lax
from jax.experimental import pallas as pl
from jax.experimental.pallas import tpu as pltpu

THRESHOLD = 0.5   # BrainCog IFNode default threshold
N1 = 12           # x1 / node[0] width
N2 = 24           # x2 / node[1] width
LANE = 128        # lane tile; batch tiles are multiples of this


def _make_kernel(valid_b, tile_b, tiles_per_split, needs_mask):
    """Kernel factory; valid_b / tile_b / tiles_per_split / needs_mask are static Python values."""

    def kernel(x1_ref, x2_ref, w0_ref, w1_ref, w2_ref,
               s0_ref, s1_ref, dw1_ref, dw2_ref):
        t = pl.program_id(1)

        # dw blocks are resident across the (inner, "arbitrary") batch-tile axis.
        @pl.when(t == 0)
        def _init():
            dw1_ref[...] = jnp.zeros_like(dw1_ref)
            dw2_ref[...] = jnp.zeros_like(dw2_ref)

        x1 = x1_ref[...]                                            # (12, TB) feature-major
        x2 = x2_ref[...]                                            # (24, TB)

        # ---- stdp[0]: i0^T = W0^T @ x1^T ; s0 = IF(i0) ----
        i0 = jnp.dot(w0_ref[...], x1, preferred_element_type=jnp.float32)   # (12, TB)
        s0 = (i0 > THRESHOLD).astype(jnp.float32)

        # ---- stdp[1]: i1^T = W1^T @ s0^T + W2^T @ x2^T ; s1 = IF(i1) ----
        i1 = (jnp.dot(w1_ref[...], s0, preferred_element_type=jnp.float32)
              + jnp.dot(w2_ref[...], x2, preferred_element_type=jnp.float32))  # (24, TB)
        s1 = (i1 > THRESHOLD).astype(jnp.float32)

        if needs_mask:
            # Ragged last tile: zero out-of-range batch lanes so they contribute exactly zero
            # to the dw accumulators (garbage x2 lanes could otherwise be NaN/Inf).
            s = pl.program_id(0)
            start = (s * tiles_per_split + t) * tile_b
            col = start + lax.broadcasted_iota(jnp.int32, (1, tile_b), 1)
            valid = col < valid_b
            s1 = jnp.where(valid, s1, 0.0)
            x2 = jnp.where(valid, x2, 0.0)

        # Lane-dense spike stores (out-of-bounds lanes of a ragged tile are dropped by Pallas).
        s0_ref[...] = s0
        s1_ref[...] = s1

        # dw1[in, out] += sum_b s0[b, in] * s1[b, out] ; dw2[in, out] += sum_b x2[b, in] * s1[b, out]
        dw1_ref[...] += lax.dot_general(
            s0, s1, (((1,), (1,)), ((), ())),
            preferred_element_type=jnp.float32)[None]
        dw2_ref[...] += lax.dot_general(
            x2, s1, (((1,), (1,)), ((), ())),
            preferred_element_type=jnp.float32)[None]

    return kernel


def prepare_weights(w0, w1, w2):
    """Hoistable per-model prep: cast once to f32 and transpose to [out, in]."""
    return (jnp.asarray(w0, jnp.float32).T,
            jnp.asarray(w1, jnp.float32).T,
            jnp.asarray(w2, jnp.float32).T)


def _default_num_splits():
    """2 on dual-TensorCore parts (v7x / megacore v4 / v5p), else 1. Conservative on failure."""
    try:
        kind = jax.devices()[0].device_kind.lower()
    except Exception:
        return 1
    if ("v7" in kind) or ("v5p" in kind) or ("v4" in kind):
        return 2
    return 1


def bnesnn_forward_t(x1t, x2t, prepared_weights, *, max_batch_tile=8192, num_splits=None):
    """Feature-major entry point (no layout plumbing): x1t (12, B), x2t (24, B).

    Returns ((dw1, dw2), s0t (12, B), s1t (24, B)).
    """
    w0t, w1t, w2t = prepared_weights
    B = x1t.shape[1]
    assert x1t.shape == (N1, B) and x2t.shape == (N2, B)
    x1t = x1t.astype(jnp.float32)
    x2t = x2t.astype(jnp.float32)

    # Batch (lane) tiling: single full-width tile for small B, otherwise a multiple of 128 lanes.
    max_tile = max(LANE, (max_batch_tile // LANE) * LANE)
    if B <= max_tile:
        TB, n_tiles = B, 1
    else:
        TB = max_tile
        n_tiles = pl.cdiv(B, TB)
    needs_mask = (n_tiles * TB) != B

    if num_splits is None:
        num_splits = _default_num_splits()
    if num_splits < 1 or (n_tiles % num_splits) != 0:
        num_splits = 1                     # keep the split exact & race-free
    tiles_per_split = n_tiles // num_splits

    kernel = _make_kernel(B, TB, tiles_per_split, needs_mask)

    def col_map(s, t):
        return (0, s * tiles_per_split + t)

    out_shape = (
        jax.ShapeDtypeStruct((N1, B), jnp.float32),                  # s0^T
        jax.ShapeDtypeStruct((N2, B), jnp.float32),                  # s1^T
        jax.ShapeDtypeStruct((num_splits, N1, N2), jnp.float32),     # dw1 partials (per split)
        jax.ShapeDtypeStruct((num_splits, N2, N2), jnp.float32),     # dw2 partials (per split)
    )

    fn = pl.pallas_call(
        kernel,
        grid=(num_splits, tiles_per_split),
        in_specs=[
            pl.BlockSpec((N1, TB), col_map),               # x1^T tile
            pl.BlockSpec((N2, TB), col_map),               # x2^T tile
            pl.BlockSpec((N1, N1), lambda s, t: (0, 0)),   # W0^T (resident)
            pl.BlockSpec((N2, N1), lambda s, t: (0, 0)),   # W1^T (resident)
            pl.BlockSpec((N2, N2), lambda s, t: (0, 0)),   # W2^T (resident)
        ],
        out_specs=(
            pl.BlockSpec((N1, TB), col_map),                       # s0^T tile (lane-dense)
            pl.BlockSpec((N2, TB), col_map),                       # s1^T tile (lane-dense)
            pl.BlockSpec((1, N1, N2), lambda s, t: (s, 0, 0)),     # resident dw1 accumulator
            pl.BlockSpec((1, N2, N2), lambda s, t: (s, 0, 0)),     # resident dw2 accumulator
        ),
        out_shape=out_shape,
        compiler_params=pltpu.CompilerParams(
            # split axis may be sharded across cores; dw accumulates over the batch-tile axis.
            dimension_semantics=("parallel", "arbitrary"),
        ),
    )
    s0t, s1t, dw1_parts, dw2_parts = fn(x1t, x2t, w0t, w1t, w2t)

    dw1 = dw1_parts.sum(axis=0) if num_splits > 1 else dw1_parts[0]
    dw2 = dw2_parts.sum(axis=0) if num_splits > 1 else dw2_parts[0]
    return (dw1, dw2), s0t, s1t


def bnesnn_forward(x1, x2, w0, w1, w2, **kwargs):
    """Module-parity entry point: x1 (B, 12), x2 (B, 24); returns ((dw1, dw2), out__s, out__p)
    exactly like BNESNN.forward(x1, x2).  The input/output transposes here are layout plumbing
    only; callers that can work feature-major should use bnesnn_forward_t directly."""
    wp = prepare_weights(w0, w1, w2)
    x1t = jnp.asarray(x1, jnp.float32).T
    x2t = jnp.asarray(x2, jnp.float32).T
    (dw1, dw2), s0t, s1t = bnesnn_forward_t(x1t, x2t, wp, **kwargs)
    return (dw1, dw2), s0t.T, s1t.T


def _reference(x1, x2, w0, w1, w2):
    i0 = x1 @ w0
    s0 = (i0 > THRESHOLD).astype(jnp.float32)
    i1 = s0 @ w1 + x2 @ w2
    s1 = (i1 > THRESHOLD).astype(jnp.float32)
    return (s0.T @ s1, x2.T @ s1), s0, s1


if __name__ == "__main__":
    key = jax.random.PRNGKey(0)
    k1, k2, k3, k4, k5, k6 = jax.random.split(key, 6)

    # Deterministic parameters exactly as in BNESNN.__init__ (only the ones forward() uses).
    w0 = jnp.eye(N1, dtype=jnp.float32) * 6.0                  # con_matrix0
    w1 = jnp.zeros((N1, N2), dtype=jnp.float32)                # con_matrix1
    w2 = jnp.eye(N2, dtype=jnp.float32) * 6.0                  # con_matrix2

    def check(x1, x2, **kw):
        (dw1, dw2), out_s, out_p = bnesnn_forward(x1, x2, w0, w1, w2, **kw)
        jax.block_until_ready((dw1, dw2, out_s, out_p))
        (rdw1, rdw2), rs0, rs1 = _reference(x1, x2, w0, w1, w2)
        np.testing.assert_allclose(np.asarray(out_s), np.asarray(rs0), atol=1e-6)
        np.testing.assert_allclose(np.asarray(out_p), np.asarray(rs1), atol=1e-6)
        np.testing.assert_allclose(np.asarray(dw1), np.asarray(rdw1), atol=1e-5)
        np.testing.assert_allclose(np.asarray(dw2), np.asarray(rdw2), atol=1e-5)

    # --- small single-tile case (B = 8, binary spike inputs as fed to an SNN) ---
    B = 8
    x1 = (jax.random.uniform(k1, (B, N1)) > 0.5).astype(jnp.float32)
    x2 = (jax.random.uniform(k2, (B, N2)) > 0.5).astype(jnp.float32)
    check(x1, x2)

    # --- multi-tile case with a ragged last tile (exercises the in-kernel tail mask) ---
    B2 = 300
    y1 = (jax.random.uniform(k3, (B2, N1)) > 0.5).astype(jnp.float32)
    y2 = (jax.random.uniform(k4, (B2, N2)) > 0.5).astype(jnp.float32)
    check(y1, y2, max_batch_tile=128)

    # --- multi-tile case exercising the per-core ("parallel") split of the dw accumulators ---
    B3 = 512
    z1 = (jax.random.uniform(k5, (B3, N1)) > 0.5).astype(jnp.float32)
    z2 = (jax.random.uniform(k6, (B3, N2)) > 0.5).astype(jnp.float32)
    check(z1, z2, max_batch_tile=128, num_splits=2)

    print("KERNEL_OK")
</pallas_src>

<mosaic_0001>
module attributes {stable_mosaic.version = 11 : i64} {
  func.func @kernel(%arg0: i32, %arg1: i32, %arg2: memref<12x8xf32, #tpu.memory_space<vmem>>, %arg3: memref<24x8xf32, #tpu.memory_space<vmem>>, %arg4: memref<12x12xf32, #tpu.memory_space<vmem>>, %arg5: memref<24x12xf32, #tpu.memory_space<vmem>>, %arg6: memref<24x24xf32, #tpu.memory_space<vmem>>, %arg7: memref<12x8xf32, #tpu.memory_space<vmem>>, %arg8: memref<24x8xf32, #tpu.memory_space<vmem>>, %arg9: memref<1x12x24xf32, #tpu.memory_space<vmem>>, %arg10: memref<1x24x24xf32, #tpu.memory_space<vmem>>) attributes {dimension_semantics = [#tpu.dimension_semantics<parallel>, #tpu.dimension_semantics<arbitrary>], iteration_bounds = array<i64: 1, 1>, scalar_prefetch = 0 : i64, scratch_operands = 0 : i64, tpu.core_type = #tpu.core_type<tc>, window_params = [{transform_indices = @transform_0, window_bounds = array<i64: 12, 8>}, {transform_indices = @transform_1, window_bounds = array<i64: 24, 8>}, {pipeline_mode = #tpu.pipeline_mode<synchronous>, transform_indices = @transform_2, window_bounds = array<i64: 12, 12>}, {pipeline_mode = #tpu.pipeline_mode<synchronous>, transform_indices = @transform_3, window_bounds = array<i64: 24, 12>}, {pipeline_mode = #tpu.pipeline_mode<synchronous>, transform_indices = @transform_4, window_bounds = array<i64: 24, 24>}, {transform_indices = @transform_5, window_bounds = array<i64: 12, 8>}, {transform_indices = @transform_6, window_bounds = array<i64: 24, 8>}, {transform_indices = @transform_7, window_bounds = array<i64: 1, 12, 24>}, {transform_indices = @transform_8, window_bounds = array<i64: 1, 24, 24>}]} {
    %c0_i32 = arith.constant 0 : i32
    %0 = arith.cmpi eq, %arg1, %c0_i32 : i32
    %1 = arith.extui %0 : i1 to i32
    %c0_i32_0 = arith.constant 0 : i32
    %2 = arith.cmpi ne, %1, %c0_i32_0 : i32
    scf.if %2 {
      %cst_32 = arith.constant 0.000000e+00 : f32
      %32 = vector.broadcast %cst_32 : f32 to vector<1x12x24xf32>
      %c0_33 = arith.constant 0 : index
      %c0_34 = arith.constant 0 : index
      %c0_35 = arith.constant 0 : index
      %33 = vector.load %arg9[%c0_33, %c0_34, %c0_35] : memref<1x12x24xf32, #tpu.memory_space<vmem>>, vector<1x12x24xf32>
      tpu.vector_store %arg9[%c0_33, %c0_34, %c0_35], %32 {strides = array<i32>} : memref<1x12x24xf32, #tpu.memory_space<vmem>>, vector<1x12x24xf32>,
      %cst_36 = arith.constant 0.000000e+00 : f32
      %34 = vector.broadcast %cst_36 : f32 to vector<1x24x24xf32>
      %c0_37 = arith.constant 0 : index
      %c0_38 = arith.constant 0 : index
      %c0_39 = arith.constant 0 : index
      %35 = vector.load %arg10[%c0_37, %c0_38, %c0_39] : memref<1x24x24xf32, #tpu.memory_space<vmem>>, vector<1x24x24xf32>
      tpu.vector_store %arg10[%c0_37, %c0_38, %c0_39], %34 {strides = array<i32>} : memref<1x24x24xf32, #tpu.memory_space<vmem>>, vector<1x24x24xf32>,
    } else {
    }
    %c0 = arith.constant 0 : index
    %c0_1 = arith.constant 0 : index
    %3 = vector.load %arg2[%c0, %c0_1] : memref<12x8xf32, #tpu.memory_space<vmem>>, vector<12x8xf32>
    %c0_2 = arith.constant 0 : index
    %c0_3 = arith.constant 0 : index
    %4 = vector.load %arg3[%c0_2, %c0_3] : memref<24x8xf32, #tpu.memory_space<vmem>>, vector<24x8xf32>
    %c0_4 = arith.constant 0 : index
    %c0_5 = arith.constant 0 : index
    %5 = vector.load %arg4[%c0_4, %c0_5] : memref<12x12xf32, #tpu.memory_space<vmem>>, vector<12x12xf32>
    %cst = arith.constant dense<0.000000e+00> : vector<12x8xf32>
    %6 = tpu.matmul %5, %3, %cst {dimension_numbers = #tpu.dot_dimension_numbers<[1], [0], [0], [1], [0, 0, 1, 1], [], []>} : vector<12x12xf32>, vector<12x8xf32>, vector<12x8xf32> -> vector<12x8xf32>
    %cst_6 = arith.constant 5.000000e-01 : f32
    %7 = vector.broadcast %cst_6 : f32 to vector<12x8xf32>
    %8 = arith.cmpf ogt, %6, %7 : vector<12x8xf32>
    %9 = arith.extui %8 : vector<12x8xi1> to vector<12x8xi32>
    %10 = arith.sitofp %9 : vector<12x8xi32> to vector<12x8xf32>
    %c0_7 = arith.constant 0 : index
    %c0_8 = arith.constant 0 : index
    %11 = vector.load %arg5[%c0_7, %c0_8] : memref<24x12xf32, #tpu.memory_space<vmem>>, vector<24x12xf32>
    %cst_9 = arith.constant dense<0.000000e+00> : vector<24x8xf32>
    %12 = tpu.matmul %11, %10, %cst_9 {dimension_numbers = #tpu.dot_dimension_numbers<[1], [0], [0], [1], [0, 0, 1, 1], [], []>} : vector<24x12xf32>, vector<12x8xf32>, vector<24x8xf32> -> vector<24x8xf32>
    %c0_10 = arith.constant 0 : index
    %c0_11 = arith.constant 0 : index
    %13 = vector.load %arg6[%c0_10, %c0_11] : memref<24x24xf32, #tpu.memory_space<vmem>>, vector<24x24xf32>
    %cst_12 = arith.constant dense<0.000000e+00> : vector<24x8xf32>
    %14 = tpu.matmul %13, %4, %cst_12 {dimension_numbers = #tpu.dot_dimension_numbers<[1], [0], [0], [1], [0, 0, 1, 1], [], []>} : vector<24x24xf32>, vector<24x8xf32>, vector<24x8xf32> -> vector<24x8xf32>
    %15 = arith.addf %12, %14 : vector<24x8xf32>
    %cst_13 = arith.constant 5.000000e-01 : f32
    %16 = vector.broadcast %cst_13 : f32 to vector<24x8xf32>
    %17 = arith.cmpf ogt, %15, %16 : vector<24x8xf32>
    %18 = arith.extui %17 : vector<24x8xi1> to vector<24x8xi32>
    %19 = arith.sitofp %18 : vector<24x8xi32> to vector<24x8xf32>
    %c0_14 = arith.constant 0 : index
    %c0_15 = arith.constant 0 : index
    %20 = vector.load %arg7[%c0_14, %c0_15] : memref<12x8xf32, #tpu.memory_space<vmem>>, vector<12x8xf32>
    tpu.vector_store %arg7[%c0_14, %c0_15], %10 {strides = array<i32>} : memref<12x8xf32, #tpu.memory_space<vmem>>, vector<12x8xf32>,
    %c0_16 = arith.constant 0 : index
    %c0_17 = arith.constant 0 : index
    %21 = vector.load %arg8[%c0_16, %c0_17] : memref<24x8xf32, #tpu.memory_space<vmem>>, vector<24x8xf32>
    tpu.vector_store %arg8[%c0_16, %c0_17], %19 {strides = array<i32>} : memref<24x8xf32, #tpu.memory_space<vmem>>, vector<24x8xf32>,
    %c0_18 = arith.constant 0 : index
    %c0_19 = arith.constant 0 : index
    %c0_20 = arith.constant 0 : index
    %22 = vector.load %arg9[%c0_18, %c0_19, %c0_20] : memref<1x12x24xf32, #tpu.memory_space<vmem>>, vector<1x12x24xf32>
    %cst_21 = arith.constant dense<0.000000e+00> : vector<12x24xf32>
    %23 = tpu.matmul %10, %19, %cst_21 {dimension_numbers = #tpu.dot_dimension_numbers<[1], [1], [0], [0], [0, 0, 1, 0], [], []>} : vector<12x8xf32>, vector<24x8xf32>, vector<12x24xf32> -> vector<12x24xf32>
    %24 = vector.shape_cast %23 : vector<12x24xf32> to vector<1x12x24xf32>
    %25 = arith.addf %22, %24 : vector<1x12x24xf32>
    %c0_22 = arith.constant 0 : index
    %c0_23 = arith.constant 0 : index
    %c0_24 = arith.constant 0 : index
    %26 = vector.load %arg9[%c0_22, %c0_23, %c0_24] : memref<1x12x24xf32, #tpu.memory_space<vmem>>, vector<1x12x24xf32>
    tpu.vector_store %arg9[%c0_22, %c0_23, %c0_24], %25 {strides = array<i32>} : memref<1x12x24xf32, #tpu.memory_space<vmem>>, vector<1x12x24xf32>,
    %c0_25 = arith.constant 0 : index
    %c0_26 = arith.constant 0 : index
    %c0_27 = arith.constant 0 : index
    %27 = vector.load %arg10[%c0_25, %c0_26, %c0_27] : memref<1x24x24xf32, #tpu.memory_space<vmem>>, vector<1x24x24xf32>
    %cst_28 = arith.constant dense<0.000000e+00> : vector<24x24xf32>
    %28 = tpu.matmul %4, %19, %cst_28 {dimension_numbers = #tpu.dot_dimension_numbers<[1], [1], [0], [0], [0, 0, 1, 0], [], []>} : vector<24x8xf32>, vector<24x8xf32>, vector<24x24xf32> -> vector<24x24xf32>
    %29 = vector.shape_cast %28 : vector<24x24xf32> to vector<1x24x24xf32>
    %30 = arith.addf %27, %29 : vector<1x24x24xf32>
    %c0_29 = arith.constant 0 : index
    %c0_30 = arith.constant 0 : index
    %c0_31 = arith.constant 0 : index
    %31 = vector.load %arg10[%c0_29, %c0_30, %c0_31] : memref<1x24x24xf32, #tpu.memory_space<vmem>>, vector<1x24x24xf32>
    tpu.vector_store %arg10[%c0_29, %c0_30, %c0_31], %30 {strides = array<i32>} : memref<1x24x24xf32, #tpu.memory_space<vmem>>, vector<1x24x24xf32>,
    return
  }
  func.func @transform_0(%arg0: i32, %arg1: i32) -> (i32, i32) {
    %c1_i32 = arith.constant 1 : i32
    %0 = arith.muli %arg0, %c1_i32 : i32
    %1 = arith.addi %0, %arg1 : i32
    %c0_i32 = arith.constant 0 : i32
    %c0_i32_0 = arith.constant 0 : i32
    return %c0_i32, %1 : i32, i32
  }
  func.func @transform_1(%arg0: i32, %arg1: i32) -> (i32, i32) {
    %c1_i32 = arith.constant 1 : i32
    %0 = arith.muli %arg0, %c1_i32 : i32
    %1 = arith.addi %0, %arg1 : i32
    %c0_i32 = arith.constant 0 : i32
    %c0_i32_0 = arith.constant 0 : i32
    return %c0_i32, %1 : i32, i32
  }
  func.func @transform_2(%arg0: i32, %arg1: i32) -> (i32, i32) {
    %c0_i32 = arith.constant 0 : i32
    %c0_i32_0 = arith.constant 0 : i32
    %c0_i32_1 = arith.constant 0 : i32
    return %c0_i32, %c0_i32_0 : i32, i32
  }
  func.func @transform_3(%arg0: i32, %arg1: i32) -> (i32, i32) {
    %c0_i32 = arith.constant 0 : i32
    %c0_i32_0 = arith.constant 0 : i32
    %c0_i32_1 = arith.constant 0 : i32
    return %c0_i32, %c0_i32_0 : i32, i32
  }
  func.func @transform_4(%arg0: i32, %arg1: i32) -> (i32, i32) {
    %c0_i32 = arith.constant 0 : i32
    %c0_i32_0 = arith.constant 0 : i32
    %c0_i32_1 = arith.constant 0 : i32
    return %c0_i32, %c0_i32_0 : i32, i32
  }
  func.func @transform_5(%arg0: i32, %arg1: i32) -> (i32, i32) {
    %c1_i32 = arith.constant 1 : i32
    %0 = arith.muli %arg0, %c1_i32 : i32
    %1 = arith.addi %0, %arg1 : i32
    %c0_i32 = arith.constant 0 : i32
    %c0_i32_0 = arith.constant 0 : i32
    return %c0_i32, %1 : i32, i32
  }
  func.func @transform_6(%arg0: i32, %arg1: i32) -> (i32, i32) {
    %c1_i32 = arith.constant 1 : i32
    %0 = arith.muli %arg0, %c1_i32 : i32
    %1 = arith.addi %0, %arg1 : i32
    %c0_i32 = arith.constant 0 : i32
    %c0_i32_0 = arith.constant 0 : i32
    return %c0_i32, %1 : i32, i32
  }
  func.func @transform_7(%arg0: i32, %arg1: i32) -> (i32, i32, i32) {
    %c0_i32 = arith.constant 0 : i32
    %c0_i32_0 = arith.constant 0 : i32
    %c0_i32_1 = arith.constant 0 : i32
    return %arg0, %c0_i32, %c0_i32_0 : i32, i32, i32
  }
  func.func @transform_8(%arg0: i32, %arg1: i32) -> (i32, i32, i32) {
    %c0_i32 = arith.constant 0 : i32
    %c0_i32_0 = arith.constant 0 : i32
    %c0_i32_1 = arith.constant 0 : i32
    return %arg0, %c0_i32, %c0_i32_0 : i32, i32, i32
  }
}

</mosaic_0001>

<bundles_post_ra>
// kernel: tpu_custom_call.1
= control target key start
LH: loop header
LB: loop body
LE: loop exit
PB: predicated region body
PF: predicated region fallthrough
CT: control target
= control target key end

     0   :  { %vm106_vm0 = vcmask 1043456   ;;  %vm99_vm1 = vcmask 97280   ;;  %vm85_vm2 = vcmask 195584   ;;  %v807_v4 = vmov 0.0   ;;  %s1018_s0 = inlined_call_operand.vmem [shape: f32[12,8], index: 0, kind: input, shape index: {}]   ;;  %s1019_s1 = inlined_call_operand.vmem [shape: f32[24,8], index: 1, kind: input, shape index: {}]   ;;  %s1020_s2 = inlined_call_operand.vmem [shape: f32[12,12], index: 2, kind: input, shape index: {}]   ;;  %s1021_s3 = inlined_call_operand.vmem [shape: f32[24,12], index: 3, kind: input, shape index: {}]   ;;  %s1022_s4 = inlined_call_operand.vmem [shape: f32[24,24], index: 4, kind: input, shape index: {}]   ;;  %s1023_s5 = inlined_call_operand.vmem [shape: f32[12,8], index: 5, kind: output, shape index: {0}]   ;;  %s1024_s6 = inlined_call_operand.vmem [shape: f32[24,8], index: 6, kind: output, shape index: {1}]   ;;  %s1025_s7 = inlined_call_operand.vmem [shape: f32[1,12,24], index: 7, kind: output, shape index: {2}]   ;;  %s1026_s8 = inlined_call_operand.hbm [shape: f32[1,24,24], index: 8, kind: output, shape index: {3}]  }
   0x1   :  { %v93_v0 = vld [vmem:[%s1018_s0 + $0x8] sm:$0xf]  ;;  %v92_v1 = vld [vmem:[%s1018_s0] sm:$0xff]  ;;  %742 = vmatprep.subr.mxu0 %v807_v4 }
   0x2   :  { %v97_v2 = vld [vmem:[%s1020_s2] sm:$0xff]  ;;  %720 = vmatprep.subr.msk.mxu1 %vm106_vm0, %v93_v0  ;;  %v98_v3 = vld [vmem:[%s1020_s2 + $0x8] sm:$0xf] }
   0x3   :  { %724 = vmatprep.mubr.msk.f32.mxu1 %vm99_vm1, %v97_v2  ;;  %721 = vmatpush3.msk.msra.mxu1 %vm106_vm0, %v93_v0 }
   0x4   :  { %14 = vsyncpa [#allocation3], 0  ;;  %722 = vmatprep.subr.mxu1 %v92_v1  ;;  %v877_v5 = vld [vmem:[%s1019_s1 + $0x10] sm:$0xff]  ;;  %86 = vst.msk [vmem:[%s1025_s7] sm:$0xff] %vm85_vm2, %v807_v4  ;;  %vm808_vm3 = vmmov 0   ;;  %v897_v6 = vld [vmem:[%s1019_s1 + $0x8] sm:$0xff] }
   0x5   :  { %89 = vst.msk [vmem:[#allocation2] sm:$0xff] %vm85_vm2, %v807_v4  ;;  %90 = vst.msk [vmem:[#allocation2 + $0x8] sm:$0xff] %vm85_vm2, %v807_v4  ;;  %746 = vmatprep.mubr.msk.f32.mxu0 %vm808_vm3, %v807_v4  ;;  %723 = vmatpush3.msra.mxu1 %v92_v1  ;;  %v906_v7 = vld [vmem:[%s1019_s1] sm:$0xff]  ;;  %v195_v9 = vld [vmem:[%s1022_s4 + $0x8] sm:$0xff]  ;;  %vm390_vm4 = vcmask 60416   ;;  %vm388_vm6 = vcmask 64512  }
   0x6   :  { %91 = vst.msk [vmem:[#allocation2 + $0x10] sm:$0xff] %vm85_vm2, %v807_v4  ;;  %725 = vmatmul.mubr.msk.f32.vlgmr.msra.gmra.mxu1 %vm99_vm1, %v98_v3  ;;  %727 = vmatprep.subr.mxu1 %v807_v4  ;;  %v194_v8 = vld [vmem:[%s1022_s4] sm:$0xff]  ;;  %v196_v10 = vld [vmem:[%s1022_s4 + $0x10] sm:$0xff]  ;;  %v809_v16 = vmov 1.0   ;;  %v192_v18 = vld [vmem:[%s1021_s3 + $0x8] sm:$0xff]  ;;  %vm87_vm11 = vcmask 191488  }
   0x7   :  { %728 = vmatpush3.msra.mxu1 %v877_v5  ;;  %733 = vmatprep.mubr.msk.f32.mxu1 %vm808_vm3, %v807_v4  ;;  %v191_v14 = vld [vmem:[%s1021_s3] sm:$0xff]  ;;  %v193_v20 = vld [vmem:[%s1021_s3 + $0x10] sm:$0xff]  ;;  %88 = vst.msk [vmem:[%s1025_s7 + $0x8] sm:$0xf] %vm87_vm11, %v807_v4  ;;  %s810_s20 = smov [#allocation2]  }
   0x8   :  { %729 = vmatprep.subr.mxu1 %v807_v4  ;;  %s612_s21 = sshll.u32 %s810_s20, 4  ;;  %s613_s21 = int_to_ptr.vmem [resolvable:$true] %s612_s21 }
   0x9   :  { %730 = vmatpush3.msra.mxu1 %v897_v6  ;;  %s785_s23 = scalar_lea.vmem %s613_s21, 384  ;;  %p790_p1 = scmp.lt.s32.totalorder %s613_s21, %s613_s21 }
   0xa   :  { %731 = vmatprep.subr.mxu1 %v807_v4  ;;  %p786_p0 = scmp.ne.s32.totalorder %s613_s21, %s785_s23  ;;  %p791_p2 = scmp.lt.s32.totalorder %s785_s23, %s785_s23 }
   0xb   :  { %732 = vmatpush3.msra.mxu1 %v906_v7  ;;  %v395_v42 = vld [vmem:[%s1025_s7] sm:$0xff] }
   0xc   :  { %734 = vmatmul.mubr.msk.f32.vlgmr.msra.gmra.mxu1 %vm85_vm2, %v194_v8  ;;  %v491_v37 = vld [vmem:[#allocation2] sm:$0xff]  ;;  %v492_v45 = vld [vmem:[#allocation2 + $0x8] sm:$0xff]  ;;  %p792_p3 = por %p791_p2, %p790_p1 }
   0xd   :  { %736 = vmatprep.mubr.msk.f32.mxu1 %vm808_vm3, %v807_v4  ;;  %v493_v51 = vld [vmem:[#allocation2 + $0x10] sm:$0xff] }
   0xe   :  { %v396_v38 = vld [vmem:[%s1025_s7 + $0x8] sm:$0xf]  ;;  %p793_p4 = pnand %p792_p3, %p786_p0 }
  0x10   :  { %737 = vmatmul.mubr.msk.f32.gmra.mxu1 %vm85_vm2, %v195_v9 }
  0x11   :  { %739 = vmatprep.mubr.msk.f32.mxu1 %vm808_vm3, %v807_v4 }
  0x14   :  { %740 = vmatmul.mubr.msk.f32.gmra.mxu1 %vm85_vm2, %v196_v10 }
  0xc6   :  { %v726_v11 = vpop.f32.mrf.mxu1 }
  0xc7   :  { %vm186_vm5 = vcmp.gt.f32.partialorder %v726_v11, 0.5 }
  0xc8   :  { %v671_v12 = vsel %vm186_vm5, 1.0, %v807_v4  ;;  %v176_v13 = vpop.f32.mrf.mxu1 }
  0xc9   :  { %391 = vst.msk [vmem:[%s1023_s5 + $0x8] sm:$0xf] %vm390_vm4, %v671_v12  ;;  %vm185_vm7 = vcmp.gt.f32.partialorder %v176_v13, 0.5  ;;  %743 = vmatpush3.msk.msra.mxu0 %vm106_vm0, %v671_v12 }
  0xca   :  { %v670_v15 = vsel %vm185_vm7, 1.0, %v807_v4  ;;  %744 = vmatprep.subr.mxu0 %v807_v4 }
  0xcb   :  { %389 = vst.msk [vmem:[%s1023_s5] sm:$0xff] %vm388_vm6, %v670_v15  ;;  %745 = vmatpush3.msk.msra.mxu0 %vm185_vm7, %v809_v16  ;;  %761 = vmatprep.mubr.msk.f32.mxu1 %vm388_vm6, %v670_v15 }
  0xcc   :  { %747 = vmatmul.mubr.msk.f32.vlgmr.msra.gmra.mxu0 %vm99_vm1, %v191_v14  ;;  %v273_v17 = vpop.f32.mrf.mxu1  ;;  %764 = vmatprep.subr.mxu0 %v807_v4 }
  0xcd   :  { %749 = vmatprep.mubr.msk.f32.mxu0 %vm808_vm3, %v807_v4 }
  0xce   :  { %v735_v19 = vpop.f32.mrf.mxu1 }
  0xd0   :  { %750 = vmatmul.mubr.msk.f32.gmra.mxu0 %vm99_vm1, %v192_v18  ;;  %v278_v21 = vpop.f32.mrf.mxu1 }
  0xd1   :  { %752 = vmatprep.mubr.msk.f32.mxu0 %vm808_vm3, %v807_v4 }
  0xd2   :  { %v738_v22 = vpop.f32.mrf.mxu1 }
  0xd4   :  { %753 = vmatmul.mubr.msk.f32.gmra.mxu0 %vm99_vm1, %v193_v20  ;;  %v283_v23 = vpop.f32.mrf.mxu1 }
  0xd5   :  { %770 = vmatprep.mubr.msk.f32.mxu0 %vm808_vm3, %v807_v4 }
  0xd6   :  { %v741_v24 = vpop.f32.mrf.mxu1 }
 0x18c   :  { %v365_v25 = vpop.f32.mrf.mxu0 }
 0x18d   :  { %v366_v26 = vadd.f32 %v365_v25, %v273_v17 }
 0x18e   :  { %v748_v27 = vpop.f32.mrf.mxu0 }
 0x18f   :  { %vm379_vm8 = vcmp.gt.f32.partialorder %v366_v26, 0.5 }
 0x190   :  { %v680_v28 = vsel %vm379_vm8, 1.0, %v807_v4  ;;  %v370_v29 = vpop.f32.mrf.mxu0 }
 0x191   :  { %392 = vst.msk [vmem:[%s1024_s6] sm:$0xff] %vm388_vm6, %v680_v28  ;;  %v371_v30 = vadd.f32 %v370_v29, %v278_v21 }
 0x192   :  { %v751_v31 = vpop.f32.mrf.mxu0 }
 0x193   :  { %vm380_vm9 = vcmp.gt.f32.partialorder %v371_v30, 0.5 }
 0x194   :  { %v681_v32 = vsel %vm380_vm9, 1.0, %v807_v4  ;;  %v375_v33 = vpop.f32.mrf.mxu0 }
 0x195   :  { %393 = vst.msk [vmem:[%s1024_s6 + $0x8] sm:$0xff] %vm388_vm6, %v681_v32  ;;  %v376_v34 = vadd.f32 %v375_v33, %v283_v23 }
 0x196   :  { %v754_v35 = vpop.f32.mrf.mxu0 }
 0x197   :  { %vm381_vm10 = vcmp.gt.f32.partialorder %v376_v34, 0.5 }
 0x198   :  { %v682_v36 = vsel %vm381_vm10, 1.0, %v807_v4 }
 0x199   :  { %394 = vst.msk [vmem:[%s1024_s6 + $0x10] sm:$0xff] %vm388_vm6, %v682_v36  ;;  %755 = vmatprep.subr.msk.mxu1 %vm388_vm6, %v682_v36  ;;  %765 = vmatpush3.xpose.msk.msra.mxu0 %vm388_vm6, %v682_v36 }
 0x19a   :  { %756 = vmatpush3.xpose.msk.msra.mxu1 %vm388_vm6, %v682_v36  ;;  %766 = vmatprep.subr.mxu0 %v807_v4 }
 0x19b   :  { %757 = vmatprep.subr.msk.mxu1 %vm388_vm6, %v681_v32 }
 0x19d   :  { %767 = vmatpush3.xpose.msk.msra.mxu0 %vm388_vm6, %v681_v32 }
 0x19e   :  { %758 = vmatpush3.xpose.msk.msra.mxu1 %vm388_vm6, %v681_v32  ;;  %768 = vmatprep.subr.mxu0 %v807_v4 }
 0x19f   :  { %759 = vmatprep.subr.msk.mxu1 %vm388_vm6, %v680_v28 }
 0x1a1   :  { %769 = vmatpush3.xpose.msk.msra.mxu0 %vm388_vm6, %v680_v28 }
 0x1a2   :  { %760 = vmatpush3.xpose.msk.msra.mxu1 %vm388_vm6, %v680_v28 }
 0x1a4   :  { %771 = vmatmul.mubr.msk.f32.vlgmr.msra.gmra.mxu0 %vm388_vm6, %v906_v7 }
 0x1a5   :  { %762 = vmatmul.mubr.msk.f32.vlgmr.msra.gmra.mxu1 %vm388_vm6, %v671_v12  ;;  %773 = vmatprep.mubr.msk.f32.mxu0 %vm808_vm3, %v807_v4 }
 0x1a8   :  { %774 = vmatmul.mubr.msk.f32.gmra.mxu0 %vm388_vm6, %v897_v6 }
 0x1a9   :  { %776 = vmatprep.mubr.msk.f32.mxu0 %vm808_vm3, %v807_v4 }
 0x1ac   :  { %777 = vmatmul.mubr.msk.f32.gmra.mxu0 %vm388_vm6, %v877_v5 }
 0x264   :  { %v569_v39 = vpop.f32.mrf.mxu0 }
 0x265   :  { %v583_v40 = vadd.f32 %v569_v39, %v491_v37  ;;  %v763_v41 = vpop.f32.mrf.mxu1 }
 0x266   :  { %v487_v43 = vadd.f32 %v763_v41, %v396_v38  ;;  %v772_v44 = vpop.f32.mrf.mxu0 }
 0x267   :  { %586 = vst.msk [vmem:[#allocation2] sm:$0xff] %vm85_vm2, %v583_v40  ;;  %v477_v46 = vpop.f32.mrf.mxu1 }
 0x268   :  { %490 = vst.msk [vmem:[%s1025_s7 + $0x8] sm:$0xf] %vm87_vm11, %v487_v43  ;;  %v486_v47 = vadd.f32 %v477_v46, %v395_v42  ;;  %v574_v48 = vpop.f32.mrf.mxu0 }
 0x269   :  { %v584_v49 = vadd.f32 %v574_v48, %v492_v45 }
 0x26a   :  { %488 = vst.msk [vmem:[%s1025_s7] sm:$0xff] %vm85_vm2, %v486_v47  ;;  %v775_v50 = vpop.f32.mrf.mxu0 }
 0x26b   :  { %587 = vst.msk [vmem:[#allocation2 + $0x8] sm:$0xff] %vm85_vm2, %v584_v49 }
 0x26c   :  { %v579_v52 = vpop.f32.mrf.mxu0 }
 0x26d   :  { %v585_v53 = vadd.f32 %v579_v52, %v493_v51 }
 0x26e   :  { %v778_v54 = vpop.f32.mrf.mxu0 }
 0x26f   :  { %588 = vst.msk [vmem:[#allocation2 + $0x10] sm:$0xff] %vm85_vm2, %v585_v53 }
 0x270   :  { %796 = shalt.err (!%p793_p4)
}
 0x271   :  { %s811_s24 = smov 128   ;;  %s812_s25 = smov 8  }
 0x272   :  { %618 = dma.vmem_to_hbm [thread:$0]  %s613_s21, 384, %s1026_s8, [#allocation3], %s811_s24, %s811_s24, %s812_s25  }
 0x273   :  { %805 = dma.done.wait [#allocation3], 384  }
 0x274   :  { %806 = vsyncadd [#allocation3], 4294966912 }
 0x275   :  { %638 = vsyncpa [#allocation3], 1 }

</bundles_post_ra>
